<compile_context>
chip_gen: v5e
topology: v5e:2x2
jax: 0.10.0
libtpu: 0.0.40
codegen_flags: <defaults>
</compile_context>

<pallas_src>
import functools

import jax
import jax.numpy as jnp
from jax.experimental import pallas as pl
from jax.experimental.pallas import tpu as pltpu

LANE = 128


def _sublane_pack(dtype) -> int:
    """Minimum row multiple for a legal TPU tile at this dtype width."""
    itemsize = jnp.dtype(dtype).itemsize
    return {4: 8, 2: 16, 1: 32}.get(itemsize, 8)


def _chip_config():
    """Per-generation tuning: (bytes per block buffer, scoped-VMEM override, #TCs)."""
    kind = ""
    try:
        kind = jax.devices()[0].device_kind.lower()
    except Exception:
        pass
    if "v7" in kind:
        # 3.2 TB/s HBM: 8 MiB blocks amortize the per-step overhead; the
        # double-buffered in+out footprint is 32 MiB, so raise the scoped
        # VMEM limit explicitly (64 MiB physical on v7x).
        return 8 << 20, 40 << 20, 2
    if "v6" in kind:
        # 4 MiB blocks -> 16 MiB pipelined footprint, fits the 32 MiB default.
        return 4 << 20, None, 1
    # v5e / unknown: 2 MiB blocks -> 8 MiB pipelined, fits the 16 MiB default.
    return 2 << 20, None, 1


def _scale_kernel(x_ref, o_ref, *, scale: float):
    # x_ref / o_ref: (block_rows, 128) tiles in VMEM. Multiply in f32 for
    # accuracy (free under an HBM-bound regime), cast back to output dtype.
    o_ref[...] = (x_ref[...].astype(jnp.float32) * jnp.float32(scale)).astype(
        o_ref.dtype
    )


def _xla_fallback(x: jax.Array, scale: float) -> jax.Array:
    # Plain elementwise multiply; XLA runs this at the HBM roofline and can
    # fuse it with producers/consumers.
    return (x.astype(jnp.float32) * jnp.float32(scale)).astype(x.dtype)


def scaling_layer(
    x: jax.Array,
    scale: float,
    *,
    min_pallas_bytes: int = 1 << 20,
    alias_input: bool = False,
) -> jax.Array:
    """Elementwise x * scale (ScalingLayer.forward) as a Pallas TPU kernel.

    `scale` is baked in as a compile-time constant (it is a fixed module
    attribute); every distinct value triggers a recompile of the pallas_call.
    Set `alias_input=True` only when the caller donates `x` (e.g. via
    jax.jit(..., donate_argnums)) so the output reuses the input HBM buffer.
    """
    orig_shape = x.shape
    dtype = x.dtype
    itemsize = jnp.dtype(dtype).itemsize
    n = x.size

    # Small inputs: pallas_call launch/pipeline overhead dwarfs the work and
    # a standalone custom call blocks XLA fusion -- let XLA handle it.
    if n == 0 or n * itemsize < min_pallas_bytes:
        return _xla_fallback(x, scale)

    # Ragged sizes: a pad + slice would ~3x the HBM traffic of this purely
    # bandwidth-bound op, so hand the odd case to XLA (already at roofline).
    # TODO(synk): masked in-kernel tail (pltpu.store with a lane mask) if a
    # ragged size ever needs to stay inside Pallas.
    if n % LANE != 0:
        return _xla_fallback(x, scale)

    rows = n // LANE
    x2d = x.reshape(rows, LANE)  # lane-dense layout; no pad, no extra copy

    block_bytes, vmem_limit, num_cores = _chip_config()
    pack = _sublane_pack(dtype)
    # Rows per block for ~block_bytes, rounded down to the sublane pack.
    max_block_rows = max(pack, (block_bytes // (LANE * itemsize)) // pack * pack)

    if rows > max_block_rows:
        # Big fixed-size blocks; partial last block is masked by Pallas.
        block_rows = max_block_rows
    elif num_cores > 1 and rows > 2 * pack:
        # v7x: force >= 2 blocks so the "parallel" axis shards across both TCs
        # (a size-1 grid would idle one TensorCore).
        block_rows = ((pl.cdiv(rows, 2) + pack - 1) // pack) * pack
    else:
        # Single block covering the full row extent (always a legal shape).
        block_rows = rows
    grid = (pl.cdiv(rows, block_rows),)

    cp_kwargs = dict(dimension_semantics=("parallel",))
    if vmem_limit is not None:
        cp_kwargs["vmem_limit_bytes"] = vmem_limit

    call_kwargs = {}
    if alias_input:
        call_kwargs["input_output_aliases"] = {0: 0}

    out2d = pl.pallas_call(
        functools.partial(_scale_kernel, scale=float(scale)),
        out_shape=jax.ShapeDtypeStruct((rows, LANE), dtype),
        grid_spec=pl.GridSpec(
            grid=grid,
            in_specs=[pl.BlockSpec((block_rows, LANE), lambda i: (i, 0))],
            out_specs=pl.BlockSpec((block_rows, LANE), lambda i: (i, 0)),
        ),
        compiler_params=pltpu.CompilerParams(**cp_kwargs),
        cost_estimate=pl.CostEstimate(
            flops=n, transcendentals=0, bytes_accessed=2 * n * itemsize
        ),
        **call_kwargs,
    )(x2d)

    return out2d.reshape(orig_shape)


if __name__ == "__main__":
    key = jax.random.PRNGKey(0)
    scale = 1.0 / 255.0  # ScalingLayer.__init__ parameter (compile-time constant)

    # NCHW input, as a fastai/torchvision image batch would be.
    x = jax.random.normal(key, (2, 4, 16, 16), dtype=jnp.float32)
    ref = x * scale

    # Force the Pallas path (the default small-input threshold would route
    # this tiny demo tensor to the XLA fast path) so the kernel is exercised.
    out = scaling_layer(x, scale, min_pallas_bytes=0)
    out = jax.block_until_ready(out)
    assert out.shape == x.shape and out.dtype == x.dtype
    assert jnp.allclose(out, ref, rtol=1e-6, atol=1e-6)

    # Also check the default dispatch (small-input XLA fast path).
    out_small = jax.block_until_ready(scaling_layer(x, scale))
    assert jnp.allclose(out_small, ref, rtol=1e-6, atol=1e-6)

    print("KERNEL_OK")
</pallas_src>

<mosaic_0001>
module attributes {stable_mosaic.version = 11 : i64} {
  func.func @_scale_kernel(%arg0: i32, %arg1: memref<16x128xf32, #tpu.memory_space<vmem>>, %arg2: memref<16x128xf32, #tpu.memory_space<vmem>>) attributes {dimension_semantics = [#tpu.dimension_semantics<parallel>], iteration_bounds = array<i64: 1>, scalar_prefetch = 0 : i64, scratch_operands = 0 : i64, tpu.core_type = #tpu.core_type<tc>, window_params = [{transform_indices = @transform_0, window_bounds = array<i64: 16, 128>}, {transform_indices = @transform_1, window_bounds = array<i64: 16, 128>}]} {
    %c0 = arith.constant 0 : index
    %c0_0 = arith.constant 0 : index
    %0 = vector.load %arg1[%c0, %c0_0] : memref<16x128xf32, #tpu.memory_space<vmem>>, vector<16x128xf32>
    %cst = arith.constant 0.00392156886 : f32
    %1 = vector.broadcast %cst : f32 to vector<16x128xf32>
    %2 = arith.mulf %0, %1 : vector<16x128xf32>
    %c0_1 = arith.constant 0 : index
    %c0_2 = arith.constant 0 : index
    %3 = vector.load %arg2[%c0_1, %c0_2] : memref<16x128xf32, #tpu.memory_space<vmem>>, vector<16x128xf32>
    tpu.vector_store %arg2[%c0_1, %c0_2], %2 {strides = array<i32>} : memref<16x128xf32, #tpu.memory_space<vmem>>, vector<16x128xf32>,
    return
  }
  func.func @transform_0(%arg0: i32) -> (i32, i32) {
    %c0_i32 = arith.constant 0 : i32
    %c0_i32_0 = arith.constant 0 : i32
    return %arg0, %c0_i32 : i32, i32
  }
  func.func @transform_1(%arg0: i32) -> (i32, i32) {
    %c0_i32 = arith.constant 0 : i32
    %c0_i32_0 = arith.constant 0 : i32
    return %arg0, %c0_i32 : i32, i32
  }
}

</mosaic_0001>

<bundles_post_ra>
// kernel: tpu_custom_call.1
= control target key start
LH: loop header
LB: loop body
LE: loop exit
PB: predicated region body
PF: predicated region fallthrough
CT: control target
= control target key end

     0   :  { %6 = vsyncpa [#allocation3], 0  ;;  %s126_s0 = inlined_call_operand.hbm [shape: f32[16,128], index: 0, kind: input, shape index: {}]   ;;  %s127_s1 = inlined_call_operand.hbm [shape: f32[16,128], index: 1, kind: output, shape index: {}]  }
   0x1   :  { %7 = vsyncpa [#allocation4], 0  ;;  %s12_s8 = sshll.u32 %s126_s0, 4  ;;  %s106_s9 = smov [#allocation2]   ;;  %s13_s8 = int_to_ptr.hbm [resolvable:$true] %s12_s8 }
   0x2   :  { %s14_s10 = sshll.u32 %s106_s9, 4  ;;  %s107_s11 = smov 128   ;;  %s15_s10 = int_to_ptr.vmem [resolvable:$true] %s14_s10 }
   0x3   :  { %s108_s12 = smov 8  }
   0x4   :  { %20 = dma.hbm_to_vmem [thread:$0]  %s13_s8, 256, %s15_s10, [#allocation3], %s107_s11, %s107_s11, %s108_s12  }
   0x5   :  { %102 = dma.done.wait [#allocation3], 256  }
   0x6   :  { %103 = vsyncadd [#allocation3], 4294967040  ;;  %s109_s13 = smov [#allocation5]   ;;  %s37_s17 = sshll.u32 %s127_s1, 4  ;;  %v25_v0 = vld [vmem:[#allocation2] sm:$0xff]  ;;  %v26_v1 = vld [vmem:[#allocation2 + $0x8] sm:$0xff]  ;;  %s38_s17 = int_to_ptr.hbm [resolvable:$true] %s37_s17 }
   0x7   :  { %s35_s14 = sshll.u32 %s109_s13, 4  ;;  %v27_v2 = vmul.f32 0.003921569, %v25_v0  ;;  %v28_v3 = vmul.f32 0.003921569, %v26_v1  ;;  %s36_s14 = int_to_ptr.vmem [resolvable:$true] %s35_s14 }
   0x9   :  { %29 = vst [vmem:[#allocation5] sm:$0xff] %v27_v2 }
   0xa   :  { %30 = vst [vmem:[#allocation5 + $0x8] sm:$0xff] %v28_v3 }
   0xb   :  { %43 = dma.vmem_to_hbm [thread:$0]  %s36_s14, 256, %s38_s17, [#allocation4], %s107_s11, %s107_s11, %s108_s12  }
   0xc   :  { %104 = dma.done.wait [#allocation4], 256  }
   0xd   :  { %105 = vsyncadd [#allocation4], 4294967040 }
   0xe   :  { %48 = vsyncpa [#allocation3], 1 }
   0xf   :  { %49 = vsyncpa [#allocation4], 1 }

</bundles_post_ra>
